<compile_context>
chip_gen: v7x
topology: tpu7x:2x2x1
jax: 0.10.0
libtpu: 0.0.40
codegen_flags: <defaults>
</compile_context>

<pallas_src>
import functools

import jax
import jax.numpy as jnp
from jax.experimental import pallas as pl
from jax.experimental.pallas import tpu as pltpu

EPS = 1e-5


def ensemble_kernel(x_ref, w1_ref, b1_ref, w2_ref, b2_ref, w3_ref, b3_ref, out_ref):
    x = x_ref[...]

    # fc1 (base models + bn1 pre-folded) -> relu   (dropout = identity in eval)
    h = jnp.dot(x, w1_ref[...], preferred_element_type=jnp.float32) + b1_ref[...]
    h = jnp.maximum(h, 0.0)

    # fc2 (bn2 pre-folded) -> relu                 (dropout = identity in eval)
    h = jnp.dot(h, w2_ref[...], preferred_element_type=jnp.float32) + b2_ref[...]
    h = jnp.maximum(h, 0.0)

    # fc3 -> softmax(dim=1)
    logits = jnp.dot(h, w3_ref[...], preferred_element_type=jnp.float32) + b3_ref[...]
    logits = logits - jnp.max(logits, axis=1, keepdims=True)
    e = jnp.exp(logits)
    out_ref[...] = e / jnp.sum(e, axis=1, keepdims=True)


def fold_params(p):
    """Exact algebraic folding of base models + eval-mode BatchNorm into fc1/fc2."""
    s1 = p["g1"] * jax.lax.rsqrt(p["v1"] + EPS)                      # (1, 256)
    s2 = p["g2"] * jax.lax.rsqrt(p["v2"] + EPS)                      # (1, 128)
    w1f = (p["wm"] @ p["w1"]) * s1                                   # (D, 256)
    b1f = (p["bm"] @ p["w1"] + p["b1"] - p["m1"]) * s1 + p["be1"]    # (1, 256)
    w2f = p["w2"] * s2                                               # (256, 128)
    b2f = (p["b2"] - p["m2"]) * s2 + p["be2"]                        # (1, 128)
    return w1f, b1f, w2f, b2f, p["w3"], p["b3"]


@functools.partial(jax.jit, static_argnames=("tb",))
def ensemble_forward(x, params, *, tb=1024):
    """x: (B, D) float32. params: dict of weights (see init_params)."""
    B, D = x.shape
    w1f, b1f, w2f, b2f, w3, b3 = fold_params(params)
    H1, H2, C = w1f.shape[1], w2f.shape[1], w3.shape[1]

    # Batch tile: multiple of 8 (sublane), capped by tb; pad B so TB divides it.
    # Padded rows are computed on zeros and sliced away (rows are independent,
    # so they cannot contaminate real rows).
    TB = min(tb, max(8, ((B + 7) // 8) * 8))
    Bp = ((B + TB - 1) // TB) * TB
    if Bp != B:
        x = jnp.pad(x, ((0, Bp - B), (0, 0)))
    grid = (Bp // TB,)

    def resident(w):
        # Full-array block, same block index every step -> DMA'd once, stays
        # VMEM-resident across the whole grid.
        return pl.BlockSpec(w.shape, lambda i: (0, 0))

    weight_bytes = 4 * (w1f.size + b1f.size + w2f.size + b2f.size + w3.size + b3.size)
    cost = pl.CostEstimate(
        flops=2 * Bp * (D * H1 + H1 * H2 + H2 * C),
        transcendentals=Bp * C,
        bytes_accessed=4 * Bp * (D + C) + weight_bytes,
    )

    out = pl.pallas_call(
        ensemble_kernel,
        out_shape=jax.ShapeDtypeStruct((Bp, C), jnp.float32),
        grid=grid,
        in_specs=[
            pl.BlockSpec((TB, D), lambda i: (i, 0)),   # x: batch-tiled, pipelined
            resident(w1f), resident(b1f),
            resident(w2f), resident(b2f),
            resident(w3), resident(b3),
        ],
        out_specs=pl.BlockSpec((TB, C), lambda i: (i, 0)),
        compiler_params=pltpu.CompilerParams(dimension_semantics=("parallel",)),
        cost_estimate=cost,
    )(x, w1f, b1f, w2f, b2f, w3, b3)
    return out[:B]


def init_params(key, in_dim, num_models):
    """Deterministic synthetic parameters matching EnsembleModel.__init__ shapes."""
    ks = jax.random.split(key, 8)
    two_m = 2 * num_models

    def lin(k, fan_in, fan_out):
        bound = 1.0 / jnp.sqrt(fan_in)
        kw, kb = jax.random.split(k)
        w = jax.random.uniform(kw, (fan_in, fan_out), jnp.float32, -bound, bound)
        b = jax.random.uniform(kb, (1, fan_out), jnp.float32, -bound, bound)
        return w, b

    wm, bm = lin(ks[0], in_dim, two_m)          # fused base models: Linear(D, 2) x M
    w1, b1 = lin(ks[1], two_m, 256)             # fc1
    w2, b2 = lin(ks[2], 256, 128)               # fc2
    w3, b3 = lin(ks[3], 128, 2)                 # fc3

    # BatchNorm1d params (eval): gamma, beta, running_mean, running_var
    g1 = jnp.ones((1, 256), jnp.float32)
    be1 = jnp.zeros((1, 256), jnp.float32)
    m1 = 0.1 * jax.random.normal(ks[4], (1, 256), jnp.float32)
    v1 = jnp.ones((1, 256), jnp.float32) + 0.05 * jax.random.uniform(ks[5], (1, 256))

    g2 = jnp.ones((1, 128), jnp.float32)
    be2 = jnp.zeros((1, 128), jnp.float32)
    m2 = 0.1 * jax.random.normal(ks[6], (1, 128), jnp.float32)
    v2 = jnp.ones((1, 128), jnp.float32) + 0.05 * jax.random.uniform(ks[7], (1, 128))

    return dict(
        wm=wm, bm=bm,
        w1=w1, b1=b1, g1=g1, be1=be1, m1=m1, v1=v1,
        w2=w2, b2=b2, g2=g2, be2=be2, m2=m2, v2=v2,
        w3=w3, b3=b3,
    )


def reference_forward(x, p):
    """Pure-JAX reference (un-fused, matches the PyTorch eval path) for checking."""
    feats = x @ p["wm"] + p["bm"]
    h = feats @ p["w1"] + p["b1"]
    h = (h - p["m1"]) / jnp.sqrt(p["v1"] + EPS) * p["g1"] + p["be1"]
    h = jnp.maximum(h, 0.0)
    h = h @ p["w2"] + p["b2"]
    h = (h - p["m2"]) / jnp.sqrt(p["v2"] + EPS) * p["g2"] + p["be2"]
    h = jnp.maximum(h, 0.0)
    logits = h @ p["w3"] + p["b3"]
    return jax.nn.softmax(logits, axis=1)


if __name__ == "__main__":
    key = jax.random.PRNGKey(0)
    kx, kp, kx2 = jax.random.split(key, 3)

    B, D, M = 8, 16, 3          # batch, input features, number of base models
    params = init_params(kp, D, M)

    # Small case: single tile.
    x = jax.random.normal(kx, (B, D), jnp.float32)
    out = jax.block_until_ready(ensemble_forward(x, params))
    ref = reference_forward(x, params)
    assert out.shape == (B, 2)
    assert jnp.allclose(jnp.sum(out, axis=1), 1.0, atol=1e-5)
    assert jnp.allclose(out, ref, atol=1e-5, rtol=1e-5)

    # Non-multiple batch with an explicit tile size: exercises grid > 1 + padding.
    B2 = 300
    x2 = jax.random.normal(kx2, (B2, D), jnp.float32)
    out2 = jax.block_until_ready(ensemble_forward(x2, params, tb=128))
    ref2 = reference_forward(x2, params)
    assert out2.shape == (B2, 2)
    assert jnp.allclose(out2, ref2, atol=1e-5, rtol=1e-5)

    print("KERNEL_OK")
</pallas_src>

<mosaic_0001>
module attributes {stable_mosaic.version = 11 : i64} {
  func.func @ensemble_kernel(%arg0: i32, %arg1: memref<8x16xf32, #tpu.memory_space<vmem>>, %arg2: memref<16x256xf32, #tpu.memory_space<vmem>>, %arg3: memref<1x256xf32, #tpu.memory_space<vmem>>, %arg4: memref<256x128xf32, #tpu.memory_space<vmem>>, %arg5: memref<1x128xf32, #tpu.memory_space<vmem>>, %arg6: memref<128x2xf32, #tpu.memory_space<vmem>>, %arg7: memref<1x2xf32, #tpu.memory_space<vmem>>, %arg8: memref<8x2xf32, #tpu.memory_space<vmem>>) attributes {dimension_semantics = [#tpu.dimension_semantics<parallel>], iteration_bounds = array<i64: 1>, scalar_prefetch = 0 : i64, scratch_operands = 0 : i64, tpu.core_type = #tpu.core_type<tc>, window_params = [{transform_indices = @transform_0, window_bounds = array<i64: 8, 16>}, {pipeline_mode = #tpu.pipeline_mode<synchronous>, transform_indices = @transform_1, window_bounds = array<i64: 16, 256>}, {pipeline_mode = #tpu.pipeline_mode<synchronous>, transform_indices = @transform_2, window_bounds = array<i64: 1, 256>}, {pipeline_mode = #tpu.pipeline_mode<synchronous>, transform_indices = @transform_3, window_bounds = array<i64: 256, 128>}, {pipeline_mode = #tpu.pipeline_mode<synchronous>, transform_indices = @transform_4, window_bounds = array<i64: 1, 128>}, {pipeline_mode = #tpu.pipeline_mode<synchronous>, transform_indices = @transform_5, window_bounds = array<i64: 128, 2>}, {pipeline_mode = #tpu.pipeline_mode<synchronous>, transform_indices = @transform_6, window_bounds = array<i64: 1, 2>}, {transform_indices = @transform_7, window_bounds = array<i64: 8, 2>}]} {
    %c0 = arith.constant 0 : index
    %c0_0 = arith.constant 0 : index
    %0 = vector.load %arg1[%c0, %c0_0] : memref<8x16xf32, #tpu.memory_space<vmem>>, vector<8x16xf32>
    %c0_1 = arith.constant 0 : index
    %c0_2 = arith.constant 0 : index
    %1 = vector.load %arg2[%c0_1, %c0_2] : memref<16x256xf32, #tpu.memory_space<vmem>>, vector<16x256xf32>
    %cst = arith.constant dense<0.000000e+00> : vector<8x256xf32>
    %2 = tpu.matmul %0, %1, %cst {dimension_numbers = #tpu.dot_dimension_numbers<[1], [0], [0], [1], [0, 0, 1, 1], [], []>} : vector<8x16xf32>, vector<16x256xf32>, vector<8x256xf32> -> vector<8x256xf32>
    %c0_3 = arith.constant 0 : index
    %c0_4 = arith.constant 0 : index
    %3 = vector.load %arg3[%c0_3, %c0_4] : memref<1x256xf32, #tpu.memory_space<vmem>>, vector<1x256xf32>
    %4 = vector.broadcast %3 : vector<1x256xf32> to vector<8x256xf32>
    %5 = arith.addf %2, %4 : vector<8x256xf32>
    %cst_5 = arith.constant 0.000000e+00 : f32
    %6 = vector.broadcast %cst_5 : f32 to vector<8x256xf32>
    %7 = arith.maximumf %5, %6 : vector<8x256xf32>
    %c0_6 = arith.constant 0 : index
    %c0_7 = arith.constant 0 : index
    %8 = vector.load %arg4[%c0_6, %c0_7] : memref<256x128xf32, #tpu.memory_space<vmem>>, vector<256x128xf32>
    %cst_8 = arith.constant dense<0.000000e+00> : vector<8x128xf32>
    %9 = tpu.matmul %7, %8, %cst_8 {dimension_numbers = #tpu.dot_dimension_numbers<[1], [0], [0], [1], [0, 0, 1, 1], [], []>} : vector<8x256xf32>, vector<256x128xf32>, vector<8x128xf32> -> vector<8x128xf32>
    %c0_9 = arith.constant 0 : index
    %c0_10 = arith.constant 0 : index
    %10 = vector.load %arg5[%c0_9, %c0_10] : memref<1x128xf32, #tpu.memory_space<vmem>>, vector<1x128xf32>
    %11 = vector.broadcast %10 : vector<1x128xf32> to vector<8x128xf32>
    %12 = arith.addf %9, %11 : vector<8x128xf32>
    %cst_11 = arith.constant 0.000000e+00 : f32
    %13 = vector.broadcast %cst_11 : f32 to vector<8x128xf32>
    %14 = arith.maximumf %12, %13 : vector<8x128xf32>
    %c0_12 = arith.constant 0 : index
    %c0_13 = arith.constant 0 : index
    %15 = vector.load %arg6[%c0_12, %c0_13] : memref<128x2xf32, #tpu.memory_space<vmem>>, vector<128x2xf32>
    %cst_14 = arith.constant dense<0.000000e+00> : vector<8x2xf32>
    %16 = tpu.matmul %14, %15, %cst_14 {dimension_numbers = #tpu.dot_dimension_numbers<[1], [0], [0], [1], [0, 0, 1, 1], [], []>} : vector<8x128xf32>, vector<128x2xf32>, vector<8x2xf32> -> vector<8x2xf32>
    %c0_15 = arith.constant 0 : index
    %c0_16 = arith.constant 0 : index
    %17 = vector.load %arg7[%c0_15, %c0_16] : memref<1x2xf32, #tpu.memory_space<vmem>>, vector<1x2xf32>
    %18 = vector.broadcast %17 : vector<1x2xf32> to vector<8x2xf32>
    %19 = arith.addf %16, %18 : vector<8x2xf32>
    %cst_17 = arith.constant dense<0xFF800000> : vector<8xf32>
    %20 = vector.multi_reduction <maximumf>, %19, %cst_17 [1] : vector<8x2xf32> to vector<8xf32>
    %21 = vector.shape_cast %20 : vector<8xf32> to vector<8x1xf32>
    %22 = vector.broadcast %21 : vector<8x1xf32> to vector<8x2xf32>
    %23 = arith.subf %19, %22 : vector<8x2xf32>
    %24 = math.exp %23 : vector<8x2xf32>
    %cst_18 = arith.constant dense<0.000000e+00> : vector<8xf32>
    %25 = vector.multi_reduction <add>, %24, %cst_18 [1] : vector<8x2xf32> to vector<8xf32>
    %26 = vector.shape_cast %25 : vector<8xf32> to vector<8x1xf32>
    %27 = vector.broadcast %26 : vector<8x1xf32> to vector<8x2xf32>
    %28 = arith.divf %24, %27 : vector<8x2xf32>
    %c0_19 = arith.constant 0 : index
    %c0_20 = arith.constant 0 : index
    %29 = vector.load %arg8[%c0_19, %c0_20] : memref<8x2xf32, #tpu.memory_space<vmem>>, vector<8x2xf32>
    tpu.vector_store %arg8[%c0_19, %c0_20], %28 {strides = array<i32>} : memref<8x2xf32, #tpu.memory_space<vmem>>, vector<8x2xf32>,
    return
  }
  func.func @transform_0(%arg0: i32) -> (i32, i32) {
    %c0_i32 = arith.constant 0 : i32
    %c0_i32_0 = arith.constant 0 : i32
    return %arg0, %c0_i32 : i32, i32
  }
  func.func @transform_1(%arg0: i32) -> (i32, i32) {
    %c0_i32 = arith.constant 0 : i32
    %c0_i32_0 = arith.constant 0 : i32
    %c0_i32_1 = arith.constant 0 : i32
    return %c0_i32, %c0_i32_0 : i32, i32
  }
  func.func @transform_2(%arg0: i32) -> (i32, i32) {
    %c0_i32 = arith.constant 0 : i32
    %c0_i32_0 = arith.constant 0 : i32
    %c0_i32_1 = arith.constant 0 : i32
    return %c0_i32, %c0_i32_0 : i32, i32
  }
  func.func @transform_3(%arg0: i32) -> (i32, i32) {
    %c0_i32 = arith.constant 0 : i32
    %c0_i32_0 = arith.constant 0 : i32
    %c0_i32_1 = arith.constant 0 : i32
    return %c0_i32, %c0_i32_0 : i32, i32
  }
  func.func @transform_4(%arg0: i32) -> (i32, i32) {
    %c0_i32 = arith.constant 0 : i32
    %c0_i32_0 = arith.constant 0 : i32
    %c0_i32_1 = arith.constant 0 : i32
    return %c0_i32, %c0_i32_0 : i32, i32
  }
  func.func @transform_5(%arg0: i32) -> (i32, i32) {
    %c0_i32 = arith.constant 0 : i32
    %c0_i32_0 = arith.constant 0 : i32
    %c0_i32_1 = arith.constant 0 : i32
    return %c0_i32, %c0_i32_0 : i32, i32
  }
  func.func @transform_6(%arg0: i32) -> (i32, i32) {
    %c0_i32 = arith.constant 0 : i32
    %c0_i32_0 = arith.constant 0 : i32
    %c0_i32_1 = arith.constant 0 : i32
    return %c0_i32, %c0_i32_0 : i32, i32
  }
  func.func @transform_7(%arg0: i32) -> (i32, i32) {
    %c0_i32 = arith.constant 0 : i32
    %c0_i32_0 = arith.constant 0 : i32
    return %arg0, %c0_i32 : i32, i32
  }
}

</mosaic_0001>

<bundles_post_ra>
// kernel: ensemble_forward.1
= control target key start
LH: loop header
LB: loop body
LE: loop exit
PB: predicated region body
PF: predicated region fallthrough
CT: control target
= control target key end

     0   :  { %v497_v3 = vmov 0.0   ;;  %vm43_vm0 = vcmask 130048   ;;  %v498_v56 = vmov 0.0|0.0   ;;  %vm499_vm1 = vmmov 0   ;;  %s716_s1 = inlined_call_operand.vmem [shape: f32[16,256], index: 1, kind: input, shape index: {}]   ;;  %s717_s0 = inlined_call_operand.vmem [shape: f32[8,16], index: 0, kind: input, shape index: {}]   ;;  %s718_s3 = inlined_call_operand.vmem [shape: f32[256,128], index: 3, kind: input, shape index: {}]   ;;  %s719_s5 = inlined_call_operand.vmem [shape: f32[128,2], index: 5, kind: input, shape index: {}]   ;;  %s720_s2 = inlined_call_operand.vmem [shape: f32[1,256], index: 2, kind: input, shape index: {}]   ;;  %s721_s4 = inlined_call_operand.vmem [shape: f32[1,128], index: 4, kind: input, shape index: {}]   ;;  %s722_s6 = inlined_call_operand.vmem [shape: f32[1,2], index: 6, kind: input, shape index: {}]   ;;  %s723_s7 = inlined_call_operand.vmem [shape: f32[8,2], index: 7, kind: output, shape index: {}]  }
   0x1   :  { %v28_v0 = vld [vmem:[%s716_s1 + $0x8] sm:$0xff]  ;;  %v30_v1 = vld [vmem:[%s716_s1 + $0x18] sm:$0xff]  ;;  %v27_v2 = vld [vmem:[%s716_s1] sm:$0xff]  ;;  %111 = vmatprep.mubr.f32.mxu0 %v497_v3  ;;  %vm323_vm2 = vcmask 15360  }
   0x2   :  { %v430_v4 = vpack.c.bf16 %v30_v1, %v28_v0  ;;  %v29_v5 = vld [vmem:[%s716_s1 + $0x10] sm:$0xff]  ;;  %v136_v6 = vld [vmem:[%s718_s3 + $0x80] sm:$0xff]  ;;  %v137_v9 = vld [vmem:[%s718_s3 + $0x88] sm:$0xff] }
   0x3   :  { %v432_v7 = vpack.c.bf16 %v29_v5, %v27_v2  ;;  %v26_v8 = vld [vmem:[%s717_s0] sm:$0xff]  ;;  %v121_v11 = vld [vmem:[%s718_s3 + $0x8] sm:$0xff]  ;;  %v434_v12 = vpack.c.bf16 %v137_v9, %v136_v6  ;;  %v138_v14 = vld [vmem:[%s718_s3 + $0x90] sm:$0xff] }
   0x4   :  { %v120_v10 = vld [vmem:[%s718_s3] sm:$0xff]  ;;  %431 = vmatprep.subr.bf16.mxu0 %v430_v4  ;;  %v139_v15 = vld [vmem:[%s718_s3 + $0x98] sm:$0xff]  ;;  %v122_v16 = vld [vmem:[%s718_s3 + $0x10] sm:$0xff] }
   0x5   :  { %v436_v13 = vpack.c.bf16 %v121_v11, %v120_v10  ;;  %433 = vmatpush1.bf16.msra.mxu0 %v432_v7  ;;  %v438_v17 = vpack.c.bf16 %v139_v15, %v138_v14  ;;  %v123_v18 = vld [vmem:[%s718_s3 + $0x18] sm:$0xff]  ;;  %v140_v19 = vld [vmem:[%s718_s3 + $0xa0] sm:$0xff]  ;;  %v141_v20 = vld [vmem:[%s718_s3 + $0xa8] sm:$0xff]  ;;  %435 = vmatprep.subr.bf16.mxu1 %v434_v12  ;;  %v33_v12 = vlaneseq }
   0x6   :  { %v440_v21 = vpack.c.bf16 %v123_v18, %v122_v16  ;;  %v442_v22 = vpack.c.bf16 %v141_v20, %v140_v19  ;;  %v124_v23 = vld [vmem:[%s718_s3 + $0x20] sm:$0xff]  ;;  %v125_v24 = vld [vmem:[%s718_s3 + $0x28] sm:$0xff]  ;;  %v142_v25 = vld [vmem:[%s718_s3 + $0xb0] sm:$0xff]  ;;  %466 = vmatprep.subr.bf16.mxu0 %v498_v56 }
   0x7   :  { %437 = vmatpush3.bf16.msra.mxu1 %v436_v13  ;;  %v143_v26 = vld [vmem:[%s718_s3 + $0xb8] sm:$0xff]  ;;  %v444_v27 = vpack.c.bf16 %v125_v24, %v124_v23  ;;  %v126_v29 = vld [vmem:[%s718_s3 + $0x30] sm:$0xff]  ;;  %v144_v31 = vld [vmem:[%s718_s3 + $0xc0] sm:$0xff]  ;;  %v34_v13 = vshrl.u32 %v33_v12, 7 }
   0x8   :  { %340 = vmatmul.mubr.msk.f32.vlgmr.msra.gmra.mrb[0].mxu0 %vm43_vm0, %v26_v8  ;;  %439 = vmatprep.subr.bf16.mxu1 %v438_v17  ;;  %v446_v28 = vpack.c.bf16 %v143_v26, %v142_v25  ;;  %v127_v30 = vld [vmem:[%s718_s3 + $0x38] sm:$0xff]  ;;  %v145_v32 = vld [vmem:[%s718_s3 + $0xc8] sm:$0xff]  ;;  %v128_v35 = vld [vmem:[%s718_s3 + $0x40] sm:$0xff] }
   0x9   :  { %v448_v33 = vpack.c.bf16 %v127_v30, %v126_v29  ;;  %v450_v34 = vpack.c.bf16 %v145_v32, %v144_v31  ;;  %v129_v36 = vld [vmem:[%s718_s3 + $0x48] sm:$0xff]  ;;  %v146_v37 = vld [vmem:[%s718_s3 + $0xd0] sm:$0xff]  ;;  %v147_v38 = vld [vmem:[%s718_s3 + $0xd8] sm:$0xff]  ;;  %v35_v14 = vsub.s32 0, %v34_v13  ;;  %v39_v16 = vsub.s32 1, %v34_v13  ;;  %427 = vmatprep.mubr.msk.f32.mxu0 %vm499_vm1, %v497_v3 }
   0xa   :  { %v452_v39 = vpack.c.bf16 %v129_v36, %v128_v35  ;;  %v454_v40 = vpack.c.bf16 %v147_v38, %v146_v37  ;;  %v130_v41 = vld [vmem:[%s718_s3 + $0x50] sm:$0xff]  ;;  %v131_v42 = vld [vmem:[%s718_s3 + $0x58] sm:$0xff]  ;;  %v148_v43 = vld [vmem:[%s718_s3 + $0xe0] sm:$0xff] }
   0xb   :  { %441 = vmatpush3.bf16.msra.mxu1 %v440_v21  ;;  %v149_v44 = vld [vmem:[%s718_s3 + $0xe8] sm:$0xff]  ;;  %v456_v45 = vpack.c.bf16 %v131_v42, %v130_v41  ;;  %v132_v47 = vld [vmem:[%s718_s3 + $0x60] sm:$0xff]  ;;  %v150_v50 = vld [vmem:[%s718_s3 + $0xf0] sm:$0xff] }
   0xc   :  { %443 = vmatprep.subr.bf16.mxu1 %v442_v22  ;;  %v458_v46 = vpack.c.bf16 %v149_v44, %v148_v43  ;;  %v133_v48 = vld [vmem:[%s718_s3 + $0x68] sm:$0xff]  ;;  %v151_v51 = vld [vmem:[%s718_s3 + $0xf8] sm:$0xff]  ;;  %v134_v53 = vld [vmem:[%s718_s3 + $0x70] sm:$0xff] }
   0xd   :  { %v460_v49 = vpack.c.bf16 %v133_v48, %v132_v47  ;;  %v462_v52 = vpack.c.bf16 %v151_v51, %v150_v50  ;;  %v135_v54 = vld [vmem:[%s718_s3 + $0x78] sm:$0xff]  ;;  %v230_v57 = vld [vmem:[%s719_s5] sm:$0xff]  ;;  %v231_v58 = vld [vmem:[%s719_s5 + $0x8] sm:$0xff] }
   0xe   :  { %v464_v55 = vpack.c.bf16 %v135_v54, %v134_v53  ;;  %v232_v59 = vld [vmem:[%s719_s5 + $0x10] sm:$0xff]  ;;  %v467_v60 = vpack.c.bf16 %v231_v58, %v230_v57  ;;  %v233_v61 = vld [vmem:[%s719_s5 + $0x18] sm:$0xff]  ;;  %v234_v63 = vld [vmem:[%s719_s5 + $0x20] sm:$0xff] }
   0xf   :  { %445 = vmatpush3.bf16.msra.mxu1 %v444_v27  ;;  %v470_v62 = vpack.c.bf16 %v233_v61, %v232_v59  ;;  %v235_v0 = vld [vmem:[%s719_s5 + $0x28] sm:$0xff]  ;;  %v236_v2 = vld [vmem:[%s719_s5 + $0x30] sm:$0xff]  ;;  %v237_v4 = vld [vmem:[%s719_s5 + $0x38] sm:$0xff] }
  0x10   :  { %447 = vmatprep.subr.bf16.mxu1 %v446_v28  ;;  %468 = vmatpush3.bf16.msra.mxu0 %v467_v60  ;;  %v473_v1 = vpack.c.bf16 %v235_v0, %v234_v63  ;;  %v476_v5 = vpack.c.bf16 %v237_v4, %v236_v2  ;;  %v238_v6 = vld [vmem:[%s719_s5 + $0x40] sm:$0xff]  ;;  %v239_v7 = vld [vmem:[%s719_s5 + $0x48] sm:$0xff]  ;;  %v240_v9 = vld [vmem:[%s719_s5 + $0x50] sm:$0xff] }
  0x11   :  { %469 = vmatprep.subr.bf16.mxu0 %v498_v56  ;;  %v479_v8 = vpack.c.bf16 %v239_v7, %v238_v6  ;;  %v241_v10 = vld [vmem:[%s719_s5 + $0x58] sm:$0xff]  ;;  %v31_v15 = vld [vmem:[%s720_s2] sm:$0x3]  ;;  %v243_v26 = vld [vmem:[%s719_s5 + $0x68] sm:$0xff] }
  0x12   :  { %v482_v11 = vpack.c.bf16 %v241_v10, %v240_v9  ;;  %v36_v17 = vrot.slane %v31_v15, %v35_v14  ;;  %v40_v18 = vrot.slane %v31_v15, %v39_v16  ;;  %v242_v25 = vld [vmem:[%s719_s5 + $0x60] sm:$0xff]  ;;  %v244_v28 = vld [vmem:[%s719_s5 + $0x70] sm:$0xff]  ;;  %v245_v29 = vld [vmem:[%s719_s5 + $0x78] sm:$0xff] }
  0x13   :  { %449 = vmatpush3.bf16.msra.mxu1 %v448_v33  ;;  %v485_v27 = vpack.c.bf16 %v243_v26, %v242_v25  ;;  %v488_v30 = vpack.c.bf16 %v245_v29, %v244_v28  ;;  %v341_v32 = vld [vmem:[%s721_s4] ss:$0 sm:$0xff] }
  0x14   :  { %451 = vmatprep.subr.bf16.mxu1 %v450_v34  ;;  %471 = vmatpush3.bf16.msra.mxu0 %v470_v62  ;;  %v342_v37 = vld [vmem:[%s722_s6] ss:$0 sm:$0xff] }
  0x15   :  { %472 = vmatprep.subr.bf16.mxu0 %v498_v56 }
  0x17   :  { %453 = vmatpush3.bf16.msra.mxu1 %v452_v39 }
  0x18   :  { %455 = vmatprep.subr.bf16.mxu1 %v454_v40  ;;  %474 = vmatpush3.bf16.msra.mxu0 %v473_v1 }
  0x19   :  { %475 = vmatprep.subr.bf16.mxu0 %v498_v56 }
  0x1b   :  { %457 = vmatpush3.bf16.msra.mxu1 %v456_v45 }
  0x1c   :  { %459 = vmatprep.subr.bf16.mxu1 %v458_v46  ;;  %477 = vmatpush3.bf16.msra.mxu0 %v476_v5 }
  0x1d   :  { %478 = vmatprep.subr.bf16.mxu0 %v498_v56 }
  0x1f   :  { %461 = vmatpush3.bf16.msra.mxu1 %v460_v49 }
  0x20   :  { %463 = vmatprep.subr.bf16.mxu1 %v462_v52  ;;  %480 = vmatpush3.bf16.msra.mxu0 %v479_v8 }
  0x21   :  { %481 = vmatprep.subr.bf16.mxu0 %v498_v56 }
  0x23   :  { %465 = vmatpush3.bf16.msra.mxu1 %v464_v55 }
  0x24   :  { %483 = vmatpush3.bf16.msra.mxu0 %v482_v11 }
  0x25   :  { %484 = vmatprep.subr.bf16.mxu0 %v498_v56 }
  0x28   :  { %486 = vmatpush3.bf16.msra.mxu0 %v485_v27 }
  0x29   :  { %487 = vmatprep.subr.bf16.mxu0 %v498_v56 }
  0x2c   :  { %489 = vmatpush3.bf16.msra.mxu0 %v488_v30 }
  0xdb   :  { %v113_v19 = vpop.f32.mrb[0].mxu0 }
  0xdc   :  { %v114_v20 = vadd.f32 %v113_v19, %v36_v17  ;;  %v115_v21 = vpop.f32.mrb[1].mxu0 }
  0xdd   :  { %v116_v22 = vadd.f32 %v115_v21, %v40_v18 }
  0xde   :  { %v118_v24 = vmax.f32 %v114_v20, 0.0 }
  0xdf   :  { %v119_v23 = vmax.f32 %v116_v22, 0.0 }
  0xe1   :  { %223 = vmatprep.mubr.f32.mxu1 %v119_v23 }
  0xe2   :  { %224 = vmatmul.mubr.f32.vlgmr.msra.gmra.mrb[0].mxu1 %v118_v24 }
 0x1b5   :  { %v375_v31 = vpop.f32.mrb[0].mxu1 }
 0x1b6   :  { %v376_v33 = vpop.f32.mrb[1].mxu1 }
 0x1b7   :  { %v377_v34 = vadd.f32 %v376_v33, %v375_v31 }
 0x1b9   :  { %v226_v35 = vadd.f32 %v377_v34, %v341_v32 }
 0x1bb   :  { %v229_v36 = vmax.f32 %v226_v35, 0.0 }
 0x1bd   :  { %428 = vmatmul.mubr.f32.vlgmr.msra.gmra.mrb[2].mxu0 %v229_v36 }
 0x290   :  { %v319_v38 = vpop.f32.mrb[2].mxu0 }
 0x291   :  { %v320_v39 = vadd.f32 %v342_v37, %v319_v38  ;;  %v429_v40 = vpop.f32.mrb[3].mxu0 }
 0x293   :  { %v324_v3 = vsel %vm323_vm2, %v320_v39, -inf }
 0x294   :  { %325 = vmax.xlane.f32.xlu0 %v324_v3 }
 0x321   :  { %v326_v41 = vpop.xlane.xlu0 %325 }
 0x322   :  { %v327_v42 = vsub.f32 %v320_v39, %v326_v41 }
 0x324   :  { %v328_v43 = vmul.f32 1.442695, %v327_v42 }
 0x326   :  { %493 = vpow2.f32 %v328_v43 }
 0x330   :  { %v494_v44 = vpop.eup %493 }
 0x331   :  { %v330_v45 = vsel %vm323_vm2, %v494_v44, 0.0 }
 0x332   :  { %331 = vadd.xlane.f32.xlu0 %v330_v45 }
 0x3bf   :  { %v332_v46 = vpop.xlane.xlu0 %331 }
 0x3c0   :  { %495 = vrcp.f32 %v332_v46 }
 0x3ca   :  { %v496_v47 = vpop.eup %495 }
 0x3cb   :  { %v334_v48 = vmul.f32 %v496_v47, %v494_v44 }
 0x3cd   :  { %335 = vst.msk [vmem:[%s723_s7] sm:$0xff] %vm323_vm2, %v334_v48 }

</bundles_post_ra>
